<compile_context>
chip_gen: v5e
topology: v5e:2x2
jax: 0.10.0
libtpu: 0.0.40
codegen_flags: <defaults>
</compile_context>

<pallas_src>
import jax
import jax.numpy as jnp
from jax.experimental import pallas as pl
from jax.experimental.pallas import tpu as pltpu


def _conv_bn_relu_kernel(w_ref, b_ref, x_ref, o_ref):
    # w_ref: (tile_c2, C1)  conv weight with BN scale folded in
    # b_ref: (tile_c2, 1)   folded BN bias (f32)
    # x_ref: (C1, thw)      spatial tile of one batch element (NCHW-native)
    # o_ref: (tile_c2, thw)
    acc = jnp.dot(w_ref[...], x_ref[...], preferred_element_type=jnp.float32)
    o_ref[...] = jnp.maximum(acc + b_ref[...], 0.0).astype(o_ref.dtype)


def conv_bn_relu(x_nchw, conv_w, gamma, beta, running_mean, running_var,
                 eps=1e-5, use_bf16=False, out_dtype=jnp.float32):
    """x_nchw: [N, C1, H, W]; conv_w: [C2, C1, 1, 1] (PyTorch layout).

    Returns [N, C2, H, W] in `out_dtype`.  BatchNorm uses eval-mode running
    statistics folded into the conv weight + a per-channel bias.
    """
    N, C1, H, W = x_nchw.shape
    C2 = conv_w.shape[0]
    HW = H * W
    lane = 128

    # ---- fold BN (eval semantics) into the conv weight + per-channel bias ----
    scale = (gamma / jnp.sqrt(running_var + eps)).astype(jnp.float32)   # [C2]
    bias = (beta.astype(jnp.float32) - running_mean * scale)            # [C2]
    w_fused = conv_w.reshape(C2, C1).astype(jnp.float32) * scale[:, None]
    bias2d = bias.reshape(C2, 1)                                        # f32

    # Native NCHW: flatten spatial only (contiguous view, no transpose).
    x3 = x_nchw.reshape(N, C1, HW)
    in_dtype = jnp.bfloat16 if use_bf16 else jnp.float32
    x3 = x3.astype(in_dtype)
    w_fused = w_fused.astype(in_dtype)
    x_item = jnp.dtype(in_dtype).itemsize
    out_item = jnp.dtype(out_dtype).itemsize

    # ---- per-generation VMEM budget (leave headroom for compiler scratch) ----
    try:
        info = pltpu.get_tpu_info()
        vmem_cap = int(getattr(info, "vmem_capacity_bytes", 64 * 1024 * 1024))
    except Exception:
        vmem_cap = 64 * 1024 * 1024            # conservative fallback
    # ~48 MiB on v7x (64 MiB physical), ~96 MiB on v5e/v6e (128 MiB physical).
    vmem_budget = min((vmem_cap * 3) // 4, 100 * 1024 * 1024)

    # ---- C2 tiling: only for very large channel counts ----
    tile_c2 = C2
    w_cap = vmem_budget // 4                    # max bytes for 2x weight block
    if 2 * C2 * C1 * x_item > w_cap:
        for m in (256, 128, 8):                 # MXU-friendly tile multiples
            cands = [t for t in range(m, C2, m)
                     if C2 % t == 0 and 2 * t * C1 * x_item <= w_cap]
            if cands:
                tile_c2 = max(cands)
                break
    n_c2 = C2 // tile_c2

    # ---- spatial tile: divisor of the lane-padded HW, sized for ~4 MiB/step ----
    hw_lane = pl.cdiv(HW, lane) * lane
    n_cols = hw_lane // lane                    # number of 128-lane columns
    col_bytes = lane * (C1 * x_item + tile_c2 * out_item)
    w_block_bytes = tile_c2 * (C1 * x_item + 4)           # weight + bias / buffer
    target_k = max(1, (4 * 1024 * 1024) // col_bytes)     # ~4 MiB of x+out/step
    avail = (vmem_budget * 3) // 5 - 2 * w_block_bytes
    vmem_k = max(1, avail // (2 * col_bytes))              # double-buffered tiles
    mega_k = max(1, (N * n_c2 * n_cols) // 2)              # >=2 blocks for v7x 2 TCs
    k_cap = max(1, min(target_k, vmem_k, mega_k, n_cols))
    k = max(d for d in range(1, k_cap + 1) if n_cols % d == 0)
    if n_cols >= 8 and 4 * k < k_cap:
        # Ragged n_cols (e.g. prime): accept a small tail pad over tiny tiles.
        k = k_cap
        hw_pad = pl.cdiv(hw_lane, k * lane) * (k * lane)
    else:
        hw_pad = hw_lane
    thw = k * lane

    if hw_pad != HW:
        # Padded columns evaluate to ReLU(bias) (non-zero); they are sliced
        # off below, so this is only correct together with the final slice.
        x3 = jnp.pad(x3, ((0, 0), (0, 0), (0, hw_pad - HW)))

    grid = (N, hw_pad // thw, n_c2)

    cost = pl.CostEstimate(
        flops=2 * N * HW * C1 * C2,
        transcendentals=0,
        bytes_accessed=(x3.size * x_item
                        + w_fused.size * x_item
                        + C2 * 4
                        + N * C2 * hw_pad * out_item),
    )

    out3 = pl.pallas_call(
        _conv_bn_relu_kernel,
        out_shape=jax.ShapeDtypeStruct((N, C2, hw_pad), out_dtype),
        grid_spec=pltpu.PrefetchScalarGridSpec(
            num_scalar_prefetch=0,
            grid=grid,
            in_specs=[
                # fused weight / bias: constant over (n, t); varies only with c2 tile
                pl.BlockSpec((tile_c2, C1), lambda n, t, c: (c, 0)),
                pl.BlockSpec((tile_c2, 1), lambda n, t, c: (c, 0)),
                # x tile: constant over the innermost c2 axis -> not re-fetched
                pl.BlockSpec((None, C1, thw), lambda n, t, c: (n, 0, t)),
            ],
            out_specs=pl.BlockSpec((None, tile_c2, thw), lambda n, t, c: (n, c, t)),
        ),
        compiler_params=pltpu.CompilerParams(
            dimension_semantics=("parallel", "parallel", "parallel"),
            vmem_limit_bytes=int(vmem_budget),
        ),
        cost_estimate=cost,
    )(w_fused, bias2d, x3)

    if hw_pad != HW:
        out3 = out3[:, :, :HW]
    return out3.reshape(N, C2, H, W)


if __name__ == "__main__":
    # Small shapes consistent with the module defaults (k=1, s=1, p=0, g=1).
    N, C1, C2, H, W = 2, 4, 8, 16, 16
    key = jax.random.PRNGKey(0)
    k_x, k_w, k_g, k_b, k_m, k_v = jax.random.split(key, 6)

    x = jax.random.normal(k_x, (N, C1, H, W), dtype=jnp.float32)
    conv_w = jax.random.normal(k_w, (C2, C1, 1, 1), dtype=jnp.float32) * 0.1
    gamma = jax.random.uniform(k_g, (C2,), minval=0.5, maxval=1.5)
    beta = jax.random.normal(k_b, (C2,)) * 0.1
    running_mean = jax.random.normal(k_m, (C2,)) * 0.1
    running_var = jax.random.uniform(k_v, (C2,), minval=0.5, maxval=1.5)
    # TODO(synk): PyTorch BatchNorm2d in train() mode uses batch statistics; this
    # kernel reproduces eval()-mode (running-stats) semantics folded into scale/bias.

    # Pure-JAX f32 reference.
    scale = gamma / jnp.sqrt(running_var + 1e-5)
    bias = beta - running_mean * scale
    y = jnp.einsum("nchw,oc->nohw", x, conv_w.reshape(C2, C1))
    ref = jnp.maximum(y * scale[None, :, None, None] + bias[None, :, None, None], 0.0)

    # f32 path (matches the PyTorch module's default float32 semantics).
    out = conv_bn_relu(x, conv_w, gamma, beta, running_mean, running_var)
    out = jax.block_until_ready(out)
    assert out.shape == (N, C2, H, W)
    assert jnp.allclose(out, ref, atol=1e-4, rtol=1e-4)

    # Production bf16 path (half the HBM traffic; f32 accumulation in the MXU).
    out_bf16 = conv_bn_relu(x, conv_w, gamma, beta, running_mean, running_var,
                            use_bf16=True, out_dtype=jnp.bfloat16)
    out_bf16 = jax.block_until_ready(out_bf16)
    assert out_bf16.shape == (N, C2, H, W)
    assert jnp.allclose(out_bf16.astype(jnp.float32), ref, atol=3e-2, rtol=3e-2)

    print("KERNEL_OK")
</pallas_src>

<mosaic_0001>
module attributes {stable_mosaic.version = 11 : i64} {
  func.func @_conv_bn_relu_kernel(%arg0: i32, %arg1: i32, %arg2: i32, %arg3: memref<8x4xf32, #tpu.memory_space<vmem>>, %arg4: memref<8x1xf32, #tpu.memory_space<vmem>>, %arg5: memref<1x4x256xf32, #tpu.memory_space<vmem>>, %arg6: memref<1x8x256xf32, #tpu.memory_space<vmem>>) attributes {dimension_semantics = [#tpu.dimension_semantics<parallel>, #tpu.dimension_semantics<parallel>, #tpu.dimension_semantics<parallel>], iteration_bounds = array<i64: 2, 1, 1>, scalar_prefetch = 0 : i64, scratch_operands = 0 : i64, tpu.core_type = #tpu.core_type<tc>, window_params = [{transform_indices = @transform_0, window_bounds = array<i64: 8, 4>}, {transform_indices = @transform_1, window_bounds = array<i64: 8, 1>}, {transform_indices = @transform_2, window_bounds = array<i64: 1, 4, 256>}, {transform_indices = @transform_3, window_bounds = array<i64: 1, 8, 256>}]} {
    %c0 = arith.constant 0 : index
    %c0_0 = arith.constant 0 : index
    %0 = vector.load %arg3[%c0, %c0_0] : memref<8x4xf32, #tpu.memory_space<vmem>>, vector<8x4xf32>
    %c0_1 = arith.constant 0 : index
    %c0_2 = arith.constant 0 : index
    %c0_3 = arith.constant 0 : index
    %1 = vector.load %arg5[%c0_1, %c0_2, %c0_3] : memref<1x4x256xf32, #tpu.memory_space<vmem>>, vector<1x4x256xf32>
    %2 = vector.shape_cast %1 : vector<1x4x256xf32> to vector<4x256xf32>
    %cst = arith.constant dense<0.000000e+00> : vector<8x256xf32>
    %3 = tpu.matmul %0, %2, %cst {dimension_numbers = #tpu.dot_dimension_numbers<[1], [0], [0], [1], [0, 0, 1, 1], [], []>} : vector<8x4xf32>, vector<4x256xf32>, vector<8x256xf32> -> vector<8x256xf32>
    %c0_4 = arith.constant 0 : index
    %c0_5 = arith.constant 0 : index
    %4 = vector.load %arg4[%c0_4, %c0_5] : memref<8x1xf32, #tpu.memory_space<vmem>>, vector<8x1xf32>
    %5 = vector.broadcast %4 : vector<8x1xf32> to vector<8x256xf32>
    %6 = arith.addf %3, %5 : vector<8x256xf32>
    %cst_6 = arith.constant 0.000000e+00 : f32
    %7 = vector.broadcast %cst_6 : f32 to vector<8x256xf32>
    %8 = arith.maximumf %6, %7 : vector<8x256xf32>
    %c0_7 = arith.constant 0 : index
    %c0_8 = arith.constant 0 : index
    %c0_9 = arith.constant 0 : index
    %9 = vector.load %arg6[%c0_7, %c0_8, %c0_9] : memref<1x8x256xf32, #tpu.memory_space<vmem>>, vector<1x8x256xf32>
    %10 = vector.shape_cast %9 : vector<1x8x256xf32> to vector<8x256xf32>
    %11 = vector.shape_cast %8 : vector<8x256xf32> to vector<1x8x256xf32>
    tpu.vector_store %arg6[%c0_7, %c0_8, %c0_9], %11 {strides = array<i32>} : memref<1x8x256xf32, #tpu.memory_space<vmem>>, vector<1x8x256xf32>,
    return
  }
  func.func @transform_0(%arg0: i32, %arg1: i32, %arg2: i32) -> (i32, i32) {
    %c0_i32 = arith.constant 0 : i32
    %c0_i32_0 = arith.constant 0 : i32
    return %arg2, %c0_i32 : i32, i32
  }
  func.func @transform_1(%arg0: i32, %arg1: i32, %arg2: i32) -> (i32, i32) {
    %c0_i32 = arith.constant 0 : i32
    %c0_i32_0 = arith.constant 0 : i32
    return %arg2, %c0_i32 : i32, i32
  }
  func.func @transform_2(%arg0: i32, %arg1: i32, %arg2: i32) -> (i32, i32, i32) {
    %c0_i32 = arith.constant 0 : i32
    %c0_i32_0 = arith.constant 0 : i32
    return %arg0, %c0_i32, %arg1 : i32, i32, i32
  }
  func.func @transform_3(%arg0: i32, %arg1: i32, %arg2: i32) -> (i32, i32, i32) {
    %c0_i32 = arith.constant 0 : i32
    return %arg0, %arg2, %arg1 : i32, i32, i32
  }
}

</mosaic_0001>

<bundles_post_ra>
// kernel: tpu_custom_call.1
= control target key start
LH: loop header
LB: loop body
LE: loop exit
PB: predicated region body
PF: predicated region fallthrough
CT: control target
= control target key end

     0   :  { %8 = vsyncpa [#allocation3], 0  ;;  %s722_s0 = inlined_call_operand.vmem [shape: f32[8,4], index: 0, kind: input, shape index: {}]   ;;  %s723_s1 = inlined_call_operand.vmem [shape: f32[8,1], index: 1, kind: input, shape index: {}]   ;;  %s724_s2 = inlined_call_operand.vmem [shape: f32[2,4,256], index: 2, kind: input, shape index: {}]   ;;  %s725_s3 = inlined_call_operand.hbm [shape: f32[2,8,256], index: 3, kind: output, shape index: {}]  }
   0x1   :  { %10 = vsyncpa [#allocation3 + $0x1], 0  ;;  %s619_s12 = smov 0   ;;  %s621_s13 = smov 0  }
   0x2   :  { %s623_s14 = smov 0   ;;  %s625_s15 = smov 0  }
   0x3   :  { %s627_s16 = smov 0   ;;  %s629_s17 = smov 0  }
   0x4 LB: > { %s440_s18 = sadd.s32 4294967295, %s596_s17   ;;  %s441_s19 = sadd.s32 4294967294, %s596_s17   ;;  %s596_s17 = sphi %s629_s17, %s16_s17   ;;  %s592_s16 = sphi %s627_s16, %s732_s16   ;;  %s588_s15 = sphi %s625_s15, %s731_s15   ;;  %s584_s14 = sphi %s623_s14, %s730_s14   ;;  %s580_s13 = sphi %s621_s13, %s729_s13   ;;  %s576_s12 = sphi %s619_s12, %s728_s12  }
   0x5   : > { %s35_s20 = sadd.s32 1, %s592_s16  ;;  %s126_s21 = sadd.s32 1, %s584_s14 }
   0x6   : > { %p37_p0 = scmp.ge.s32.totalorder %s35_s20, 2  ;;  %p136_p1 = scmp.ne.s32.totalorder %s584_s14, %s580_s13 }
   0x7   : > { %p137_p2 = scmp.eq.s32.totalorder %s440_s18, 1  ;;  %p142_p3 = scmp.ne.s32.totalorder %s580_s13, %s576_s12 }
   0x8   : > { %s734_s20 = smov (%p37_p0, %s35_s20), 0  ;;  %p143_p5 = scmp.eq.s32.totalorder %s441_s19, 1 }
   0x9   : > { %p659_p4 = por %p137_p2, %p136_p1  ;;  %s119_s23 = ssub.s32 %s592_s16, %s734_s20 }
   0xa   : > { %p446_p6 = scmp.ge.s32.totalorder %s596_s17, 1  ;;  %p124_p7 = scmp.eq.s32.totalorder %s119_s23, 0 }
   0xb   : > { %p666_p8 = por %p143_p5, %p142_p3  ;;  %p188_p9 = scmp.lt.s32.totalorder %s596_s17, 3 }
   0xc   : > { %s672_s25 = scalar_select %p124_p7, %s584_s14, %s126_s21  }
   0xd   : > { %p189_p10 = pnand %p446_p6, %p188_p9 }
   0xe   : > { %p233_p11 = scmp.lt.s32.totalorder (!%p189_p10), %s588_s15, 1  ;;  %s221_s8 = sand.u32 (!%p189_p10), 1, %s580_s13  }
   0xf   : > { %192 = sbr.rel (%p189_p10) target bundleno = 168 (0xa8), region = 32  ;;  %s447_s9 = sshll.u32 (!%p189_p10), %s221_s8, 4 }
  0x10   : > { %s460_s10 = sshll.u32 (!%p189_p10), %s588_s15, 4  ;;  %s223_s21 = scalar_lea.vmem (!%p189_p10), [#allocation2], %s447_s9 }
  0x11   : > { %s324_s19 = scalar_lea.hbm (!%p189_p10), %s725_s3, %s460_s10  ;;  %s326_s23 = sshll.u32 (!%p189_p10), %s223_s21, 4  ;;  %s327_s23 = int_to_ptr.vmem [resolvable:$true] %s326_s23 }
  0x12   : > { %s328_s26 = sshll.u32 (!%p189_p10), %s324_s19, 4  ;;  %s538_s4 = scalar_lea.hbm (!%p189_p10), %s725_s3, 32  ;;  %s329_s26 = int_to_ptr.hbm [resolvable:$true] %s328_s26 }
  0x13   : > { %s532_s27 = sshra.s32 (!%p189_p10), %s329_s26, 4  ;;  %s533_s27 = int_to_ptr.hbm [resolvable:$true] %s532_s27 }
  0x14   : > { %v245_v0 = vld [vmem:[%s723_s1] sm:$0xff]  ;;  %v598_v1 = vmov 0   ;;  %s234_s28 = scalar_select %p233_p11, %s588_s15, 1  ;;  %vm259_vm0 = vcmask 1043456   ;;  %vm255_vm1 = vcmask 31744  }
  0x15   : > { %517 = vset.pattern.permute.xlu0 %v598_v1  ;;  %v243_v3 = vld [vmem:[%s722_s0] sm:$0xff]  ;;  %s309_s15 = scalar_lea.sflag [#allocation3], %s221_s8  ;;  %p539_p1 = scmp.lt.s32.totalorder %s533_s27, %s725_s3 }
  0x16   : > { %248 = vperm.xlu0 %517, %v245_v0   ;;  %s459_s29 = sshll.u32 %s234_s28, 3  ;;  %s534_s28 = scalar_lea.hbm %s533_s27, 16 }
  0x17   : > { %s240_s5 = scalar_lea.vmem %s724_s2, %s459_s29  ;;  %p535_p12 = scmp.ne.s32.totalorder %s533_s27, %s534_s28 }
  0x18   : > { %v244_v2 = vld [vmem:[%s240_s5] sm:$0xff]  ;;  %p540_p2 = scmp.lt.s32.totalorder %s538_s4, %s534_s28 }
  0x19   : > { %252 = vst [vmem:[#allocation1] ss:$2 sm:$0xff] %v244_v2  ;;  %p536_p13 = pnand %p535_p12, %p659_p4 }
  0x1a   : > { %p541_p3 = por %p540_p2, %p539_p1 }
  0x1b   : > { %p537_p0 = pneg %p536_p13 }
  0x1d   : > { %p542_p5 = pnand %p541_p3, %p537_p0 }
  0x20   : > { %v253_v4 = vld.sshfl [vmem:[#allocation1] sm:$0xff pattern:$0x75316420]  ;;  %v254_v5 = vld.sshfl [vmem:[#allocation1 + $0x8] sm:$0xff pattern:$0x75316420] }
  0x21   : > { %450 = vmatpush.msk.msra.mxu0 %vm259_vm0, %v253_v4  ;;  %452 = vmatpush.msk.msra.mxu1 %vm259_vm0, %v254_v5 }
  0x22   : > { %451 = vmatmul.msk.f32.vlgmr.msra.gmra.mxu0 %vm255_vm1, %v243_v3  ;;  %453 = vmatmul.msk.f32.vlgmr.msra.gmra.mxu1 %vm255_vm1, %v243_v3 }
  0x88   : > { %v249_v6 = vpop.permute.xlu0 %248 }
  0x9f   : > { %v281_v7 = vpop.f32.mrf.mxu0  ;;  %v301_v8 = vpop.f32.mrf.mxu1 }
  0xa0   : > { %v282_v9 = vadd.f32 %v281_v7, %v249_v6  ;;  %v302_v10 = vadd.f32 %v301_v8, %v249_v6 }
  0xa2   : > { %v304_v11 = vmax.f32 %v282_v9, 0.0  ;;  %v305_v12 = vmax.f32 %v302_v10, 0.0 }
  0xa4   : > { %306 = vst [vmem:[%s223_s21] sm:$0xff] %v304_v11 }
  0xa5   : > { %307 = vst [vmem:[%s223_s21 + $0x8] sm:$0xff] %v305_v12 }
  0xa6   : > { %545 = shalt.err (!%p542_p5)
}
  0xa7   : > { %461 = dma.vmem_to_hbm [thread:$0]  (%p659_p4), %s327_s23, 256, %s329_s26, %s309_s15  }
  0xa8 PF: > { %p467_p6 = scmp.ge.s32.totalorder %s596_s17, 2  ;;  %s340_s7 = sand.u32 1, %s576_s12  }
  0xa9   : > { %s341_s8 = scalar_lea.sflag [#allocation3], %s340_s7 }
  0xaa   : > { %p464_p7 = pnand %p467_p6, %p666_p8 }
  0xac   : > { %p465_p9 = pneg %p464_p7 }
  0xae   : > { %571 = dma.done.wait (%p465_p9), %s341_s8, 256  }
  0xaf   : > { %573 = vsyncadd (%p465_p9), %s341_s8, 4294967040  ;;  %s16_s17 = sadd.s32 1, %s596_s17   ;;  %s728_s12 = smov %s580_s13 }
  0xb0   : > { %p13_p10 = scmp.ge.s32.totalorder %s16_s17, 4   ;;  %s729_s13 = smov %s584_s14 }
  0xb1   : > { %s730_s14 = smov %s672_s25  ;;  %s731_s15 = smov %s592_s16 }
  0xb2   : > { %s732_s16 = smov %s734_s20  ;;  %15 = sbr.rel (!%p13_p10) target bundleno = 4 (0x4), region = 73 }
  0xb7   :  { %347 = vsyncpa [#allocation3], 1 }
  0xb8   :  { %349 = vsyncpa [#allocation3 + $0x1], 1 }

</bundles_post_ra>
